<compile_context>
chip_gen: v6e
topology: v6e:2x2x1
jax: 0.10.0
libtpu: 0.0.40
codegen_flags: <defaults>
</compile_context>

<pallas_src>
import jax
import jax.numpy as jnp
from jax import lax
from jax.experimental import pallas as pl
from jax.experimental.pallas import tpu as pltpu

# ---------------- problem sizes (small, consistent with the module) ----------------
N = 2          # batch
CIN = 4        # in_planes
COUT = 8       # out_planes
H = W = 16     # spatial
K = 3          # kernel_size
PAD = 1        # padding
EPS = 1e-5

HW = H * W                 # 256 output lanes (multiple of 128 -> lane-dense stores)
HPAD = H + 2 * PAD         # pad rows only; column edges handled with lane masks
FLAT = HPAD * W            # 288 = flattened H-padded image length
L = 384                    # lane-padded flat length (1 leading zero + image + slack)

# static-shape guards (the indexing/mask tricks below assume these)
assert K == 3 and PAD == 1, "tap/mask structure assumes a 3x3 kernel with padding=1"
assert W & (W - 1) == 0, "column-mask trick assumes W is a power of two"
assert HW % 128 == 0, "output must be lane-dense (multiple of 128 lanes)"
assert L % 128 == 0 and L >= (K - 1) * W + (K - 1) + HW, "lane pad too small for tap shifts"
assert L >= FLAT + 1


# ---------------- Pallas kernel ----------------
def _dsc_kernel(x_ref, wdw_ref, wpw_ref, o_ref):
    # x_ref  : (1, CIN, L)      H-padded, row-major flattened input for one image
    # wdw_ref: (CIN, K*K + 1)   folded depthwise taps (cols 0..8, col = dy*K+dx) + BN1 shift
    # wpw_ref: (COUT, CIN + 1)  folded pointwise weights (cols 0..CIN-1) + BN2 shift
    # o_ref  : (1, COUT, HW)    flattened-NCHW output for one image (lane-dense)
    x = x_ref[0]                                      # (CIN, L)
    w = wdw_ref[...]                                  # (CIN, K*K+1)

    # Output-column index of every lane; gates the horizontal taps at the W edges.
    col = lax.broadcasted_iota(jnp.int32, (1, HW), 1) & (W - 1)   # ox = i % W (W pow2)
    mask_l = col >= 1          # tap dx=0 reads column ox-1 (invalid at ox=0)
    mask_r = col <= W - 2      # tap dx=2 reads column ox+1 (invalid at ox=W-1)

    def window(dy, dx):
        base = dy * W + dx                            # flat lane shift for this tap
        if base == 0:
            return x[:, :HW]
        # roll(x, L-base)[i] == x[i+base] for i < HW (max index 289 < L, no wraparound)
        return pltpu.roll(x, shift=L - base, axis=1)[:, :HW]

    # ---- depthwise 3x3: lane-shifted windows (XLU roll) * per-channel taps (VPU FMA) ----
    # Edge masks hoisted out of the tap loop: 2 selects total instead of 6.
    acc_c = jnp.zeros((CIN, HW), jnp.float32)
    acc_l = jnp.zeros((CIN, HW), jnp.float32)
    acc_r = jnp.zeros((CIN, HW), jnp.float32)
    for dy in range(K):
        acc_l = acc_l + window(dy, 0) * w[:, dy * K + 0:dy * K + 1]
        acc_c = acc_c + window(dy, 1) * w[:, dy * K + 1:dy * K + 2]
        acc_r = acc_r + window(dy, 2) * w[:, dy * K + 2:dy * K + 3]
    acc = acc_c + jnp.where(mask_l, acc_l, 0.0) + jnp.where(mask_r, acc_r, 0.0)
    h = jnp.maximum(acc + w[:, K * K:K * K + 1], 0.0)   # BN1 shift + ReLU -> (CIN, HW)

    # ---- pointwise 1x1 conv on the (idle) MXU: (COUT,CIN) x (CIN,HW) ----
    wp = wpw_ref[...]                                   # (COUT, CIN+1)
    y = jnp.dot(wp[:, :CIN], h,
                preferred_element_type=jnp.float32,
                precision=lax.Precision.HIGHEST)        # keep f32 accuracy
    o_ref[0] = jnp.maximum(y + wp[:, CIN:CIN + 1], 0.0)  # BN2 shift + ReLU, lane-dense store


# ---------------- one-time parameter packing (call at load time, NOT per forward) ----------
def fold_params(wdw_oihw, wpw_oihw, bn1, bn2):
    g1, be1, m1, v1 = bn1
    g2, be2, m2, v2 = bn2

    s1 = g1 / jnp.sqrt(v1 + EPS)          # BN1 scale, folded into depthwise taps
    b1 = be1 - m1 * s1                    # BN1 shift
    s2 = g2 / jnp.sqrt(v2 + EPS)          # BN2 scale, folded into pointwise weights
    b2 = be2 - m2 * s2                    # BN2 shift

    wdw = (wdw_oihw[:, 0, :, :] * s1[:, None, None]).reshape(CIN, K * K)   # col = dy*K+dx
    wdw_b1 = jnp.concatenate([wdw, b1[:, None]], axis=1)                   # (CIN, K*K+1)

    wpw = wpw_oihw[:, :, 0, 0] * s2[:, None]                               # (COUT, CIN)
    wpw_b2 = jnp.concatenate([wpw, b2[:, None]], axis=1)                   # (COUT, CIN+1)
    return jax.device_put(wdw_b1), jax.device_put(wpw_b2)


# ---------------- per-call forward (single jit: input prep + pallas_call) ----------------
@jax.jit
def dsc_forward(x_nchw, wdw_b1, wpw_b2):
    """x_nchw: (N, CIN, H, W) float32. Returns (N, COUT, H, W) float32."""
    # NCHW -> pad H only -> flatten HPAD*W onto lanes; leading zero absorbs the -PAD column.
    xp = jnp.pad(x_nchw.astype(jnp.float32),
                 ((0, 0), (0, 0), (PAD, PAD), (0, 0)))            # (N, CIN, HPAD, W)
    x_flat = xp.reshape(N, CIN, FLAT)
    x_flat = jnp.pad(x_flat, ((0, 0), (0, 0), (1, L - FLAT - 1)))  # (N, CIN, L)

    out = pl.pallas_call(
        _dsc_kernel,
        out_shape=jax.ShapeDtypeStruct((N, COUT, HW), jnp.float32),
        grid_spec=pltpu.PrefetchScalarGridSpec(
            num_scalar_prefetch=0,
            grid=(N,),                                  # batch on the grid (2nd TC on v7x)
            in_specs=[
                pl.BlockSpec((1, CIN, L), lambda n: (n, 0, 0)),
                pl.BlockSpec((CIN, K * K + 1), lambda n: (0, 0)),
                pl.BlockSpec((COUT, CIN + 1), lambda n: (0, 0)),
            ],
            out_specs=pl.BlockSpec((1, COUT, HW), lambda n: (n, 0, 0)),
        ),
        compiler_params=pltpu.CompilerParams(
            dimension_semantics=("parallel",)),
    )(x_flat, wdw_b1, wpw_b2)

    # output is already flattened NCHW -> pure reshape, no transpose
    return out.reshape(N, COUT, H, W)


# ---------------- pure-JAX reference (correctness check) ----------------
def reference_forward(x_nchw, wdw_oihw, wpw_oihw, bn1, bn2):
    g1, be1, m1, v1 = bn1
    g2, be2, m2, v2 = bn2

    dw = lax.conv_general_dilated(
        x_nchw, wdw_oihw, window_strides=(1, 1),
        padding=[(PAD, PAD), (PAD, PAD)],
        feature_group_count=CIN,
        dimension_numbers=("NCHW", "OIHW", "NCHW"),
        precision=lax.Precision.HIGHEST)
    h = (dw - m1[None, :, None, None]) / jnp.sqrt(v1[None, :, None, None] + EPS)
    h = h * g1[None, :, None, None] + be1[None, :, None, None]
    h = jnp.maximum(h, 0.0)

    pw = lax.conv_general_dilated(
        h, wpw_oihw, window_strides=(1, 1), padding=[(0, 0), (0, 0)],
        dimension_numbers=("NCHW", "OIHW", "NCHW"),
        precision=lax.Precision.HIGHEST)
    y = (pw - m2[None, :, None, None]) / jnp.sqrt(v2[None, :, None, None] + EPS)
    y = y * g2[None, :, None, None] + be2[None, :, None, None]
    return jnp.maximum(y, 0.0)


if __name__ == "__main__":
    key = jax.random.PRNGKey(0)
    ks = jax.random.split(key, 8)

    x = jax.random.normal(ks[0], (N, CIN, H, W), jnp.float32)

    # parameters, deterministic synthetic init (matching PyTorch module shapes)
    wdw = jax.random.normal(ks[1], (CIN, 1, K, K), jnp.float32) * 0.3     # depthwise.weight
    wpw = jax.random.normal(ks[2], (COUT, CIN, 1, 1), jnp.float32) * 0.3  # pointwise.weight

    bn1 = (
        jax.random.uniform(ks[3], (CIN,), jnp.float32, 0.5, 1.5),   # gamma
        jax.random.normal(ks[4], (CIN,), jnp.float32) * 0.1,        # beta
        jax.random.normal(ks[5], (CIN,), jnp.float32) * 0.1,        # running_mean
        jax.random.uniform(ks[6], (CIN,), jnp.float32, 0.5, 1.5),   # running_var
    )
    k2 = jax.random.split(ks[7], 4)
    bn2 = (
        jax.random.uniform(k2[0], (COUT,), jnp.float32, 0.5, 1.5),
        jax.random.normal(k2[1], (COUT,), jnp.float32) * 0.1,
        jax.random.normal(k2[2], (COUT,), jnp.float32) * 0.1,
        jax.random.uniform(k2[3], (COUT,), jnp.float32, 0.5, 1.5),
    )

    # One-time parameter-load-time packing (kept out of the per-call path).
    wdw_b1, wpw_b2 = fold_params(wdw, wpw, bn1, bn2)

    out = jax.block_until_ready(dsc_forward(x, wdw_b1, wpw_b2))

    ref = jax.block_until_ready(reference_forward(x, wdw, wpw, bn1, bn2))
    assert out.shape == (N, COUT, H, W)
    assert jnp.allclose(out, ref, atol=1e-4, rtol=1e-4), (
        float(jnp.max(jnp.abs(out - ref))))

    # TODO(synk): BatchNorm is eval-mode only (fixed running stats); training-mode batch
    # statistics / momentum updates are not implemented.
    print("KERNEL_OK")
</pallas_src>

<mosaic_0001>
module attributes {stable_mosaic.version = 11 : i64} {
  func.func @_dsc_kernel(%arg0: i32, %arg1: memref<1x4x384xf32, #tpu.memory_space<vmem>>, %arg2: memref<4x10xf32, #tpu.memory_space<vmem>>, %arg3: memref<8x5xf32, #tpu.memory_space<vmem>>, %arg4: memref<1x8x256xf32, #tpu.memory_space<vmem>>) attributes {dimension_semantics = [#tpu.dimension_semantics<parallel>], iteration_bounds = array<i64: 2>, scalar_prefetch = 0 : i64, scratch_operands = 0 : i64, tpu.core_type = #tpu.core_type<tc>, window_params = [{transform_indices = @transform_0, window_bounds = array<i64: 1, 4, 384>}, {pipeline_mode = #tpu.pipeline_mode<synchronous>, transform_indices = @transform_1, window_bounds = array<i64: 4, 10>}, {pipeline_mode = #tpu.pipeline_mode<synchronous>, transform_indices = @transform_2, window_bounds = array<i64: 8, 5>}, {transform_indices = @transform_3, window_bounds = array<i64: 1, 8, 256>}]} {
    %c0 = arith.constant 0 : index
    %c0_0 = arith.constant 0 : index
    %c0_1 = arith.constant 0 : index
    %0 = vector.load %arg1[%c0, %c0_0, %c0_1] : memref<1x4x384xf32, #tpu.memory_space<vmem>>, vector<1x4x384xf32>
    %1 = vector.shape_cast %0 : vector<1x4x384xf32> to vector<4x384xf32>
    %c0_2 = arith.constant 0 : index
    %c0_3 = arith.constant 0 : index
    %2 = vector.load %arg2[%c0_2, %c0_3] : memref<4x10xf32, #tpu.memory_space<vmem>>, vector<4x10xf32>
    %3 = tpu.iota {dimensions = array<i32: 1>} : vector<1x256xi32>
    %c15_i32 = arith.constant 15 : i32
    %4 = vector.broadcast %c15_i32 : i32 to vector<1x256xi32>
    %5 = arith.andi %3, %4 : vector<1x256xi32>
    %c1_i32 = arith.constant 1 : i32
    %6 = vector.broadcast %c1_i32 : i32 to vector<1x256xi32>
    %7 = arith.cmpi sge, %5, %6 : vector<1x256xi32>
    %c14_i32 = arith.constant 14 : i32
    %8 = vector.broadcast %c14_i32 : i32 to vector<1x256xi32>
    %9 = arith.cmpi sle, %5, %8 : vector<1x256xi32>
    %cst = arith.constant 0.000000e+00 : f32
    %10 = vector.broadcast %cst : f32 to vector<4x256xf32>
    %cst_4 = arith.constant 0.000000e+00 : f32
    %11 = vector.broadcast %cst_4 : f32 to vector<4x256xf32>
    %cst_5 = arith.constant 0.000000e+00 : f32
    %12 = vector.broadcast %cst_5 : f32 to vector<4x256xf32>
    %13 = vector.extract_strided_slice %1 {offsets = [0, 0], sizes = [4, 256], strides = [1, 1]} : vector<4x384xf32> to vector<4x256xf32>
    %14 = vector.extract_strided_slice %2 {offsets = [0, 0], sizes = [4, 1], strides = [1, 1]} : vector<4x10xf32> to vector<4x1xf32>
    %15 = vector.broadcast %14 : vector<4x1xf32> to vector<4x256xf32>
    %16 = arith.mulf %13, %15 : vector<4x256xf32>
    %17 = arith.addf %11, %16 : vector<4x256xf32>
    %c383_i32 = arith.constant 383 : i32
    %18 = tpu.dynamic_rotate %1 by %c383_i32 dim 1 : vector<4x384xf32>, i32 -> vector<4x384xf32>
    %19 = vector.extract_strided_slice %18 {offsets = [0, 0], sizes = [4, 256], strides = [1, 1]} : vector<4x384xf32> to vector<4x256xf32>
    %20 = vector.extract_strided_slice %2 {offsets = [0, 1], sizes = [4, 1], strides = [1, 1]} : vector<4x10xf32> to vector<4x1xf32>
    %21 = vector.broadcast %20 : vector<4x1xf32> to vector<4x256xf32>
    %22 = arith.mulf %19, %21 : vector<4x256xf32>
    %23 = arith.addf %10, %22 : vector<4x256xf32>
    %c382_i32 = arith.constant 382 : i32
    %24 = tpu.dynamic_rotate %1 by %c382_i32 dim 1 : vector<4x384xf32>, i32 -> vector<4x384xf32>
    %25 = vector.extract_strided_slice %24 {offsets = [0, 0], sizes = [4, 256], strides = [1, 1]} : vector<4x384xf32> to vector<4x256xf32>
    %26 = vector.extract_strided_slice %2 {offsets = [0, 2], sizes = [4, 1], strides = [1, 1]} : vector<4x10xf32> to vector<4x1xf32>
    %27 = vector.broadcast %26 : vector<4x1xf32> to vector<4x256xf32>
    %28 = arith.mulf %25, %27 : vector<4x256xf32>
    %29 = arith.addf %12, %28 : vector<4x256xf32>
    %c368_i32 = arith.constant 368 : i32
    %30 = tpu.dynamic_rotate %1 by %c368_i32 dim 1 : vector<4x384xf32>, i32 -> vector<4x384xf32>
    %31 = vector.extract_strided_slice %30 {offsets = [0, 0], sizes = [4, 256], strides = [1, 1]} : vector<4x384xf32> to vector<4x256xf32>
    %32 = vector.extract_strided_slice %2 {offsets = [0, 3], sizes = [4, 1], strides = [1, 1]} : vector<4x10xf32> to vector<4x1xf32>
    %33 = vector.broadcast %32 : vector<4x1xf32> to vector<4x256xf32>
    %34 = arith.mulf %31, %33 : vector<4x256xf32>
    %35 = arith.addf %17, %34 : vector<4x256xf32>
    %c367_i32 = arith.constant 367 : i32
    %36 = tpu.dynamic_rotate %1 by %c367_i32 dim 1 : vector<4x384xf32>, i32 -> vector<4x384xf32>
    %37 = vector.extract_strided_slice %36 {offsets = [0, 0], sizes = [4, 256], strides = [1, 1]} : vector<4x384xf32> to vector<4x256xf32>
    %38 = vector.extract_strided_slice %2 {offsets = [0, 4], sizes = [4, 1], strides = [1, 1]} : vector<4x10xf32> to vector<4x1xf32>
    %39 = vector.broadcast %38 : vector<4x1xf32> to vector<4x256xf32>
    %40 = arith.mulf %37, %39 : vector<4x256xf32>
    %41 = arith.addf %23, %40 : vector<4x256xf32>
    %c366_i32 = arith.constant 366 : i32
    %42 = tpu.dynamic_rotate %1 by %c366_i32 dim 1 : vector<4x384xf32>, i32 -> vector<4x384xf32>
    %43 = vector.extract_strided_slice %42 {offsets = [0, 0], sizes = [4, 256], strides = [1, 1]} : vector<4x384xf32> to vector<4x256xf32>
    %44 = vector.extract_strided_slice %2 {offsets = [0, 5], sizes = [4, 1], strides = [1, 1]} : vector<4x10xf32> to vector<4x1xf32>
    %45 = vector.broadcast %44 : vector<4x1xf32> to vector<4x256xf32>
    %46 = arith.mulf %43, %45 : vector<4x256xf32>
    %47 = arith.addf %29, %46 : vector<4x256xf32>
    %c352_i32 = arith.constant 352 : i32
    %48 = tpu.dynamic_rotate %1 by %c352_i32 dim 1 : vector<4x384xf32>, i32 -> vector<4x384xf32>
    %49 = vector.extract_strided_slice %48 {offsets = [0, 0], sizes = [4, 256], strides = [1, 1]} : vector<4x384xf32> to vector<4x256xf32>
    %50 = vector.extract_strided_slice %2 {offsets = [0, 6], sizes = [4, 1], strides = [1, 1]} : vector<4x10xf32> to vector<4x1xf32>
    %51 = vector.broadcast %50 : vector<4x1xf32> to vector<4x256xf32>
    %52 = arith.mulf %49, %51 : vector<4x256xf32>
    %53 = arith.addf %35, %52 : vector<4x256xf32>
    %c351_i32 = arith.constant 351 : i32
    %54 = tpu.dynamic_rotate %1 by %c351_i32 dim 1 : vector<4x384xf32>, i32 -> vector<4x384xf32>
    %55 = vector.extract_strided_slice %54 {offsets = [0, 0], sizes = [4, 256], strides = [1, 1]} : vector<4x384xf32> to vector<4x256xf32>
    %56 = vector.extract_strided_slice %2 {offsets = [0, 7], sizes = [4, 1], strides = [1, 1]} : vector<4x10xf32> to vector<4x1xf32>
    %57 = vector.broadcast %56 : vector<4x1xf32> to vector<4x256xf32>
    %58 = arith.mulf %55, %57 : vector<4x256xf32>
    %59 = arith.addf %41, %58 : vector<4x256xf32>
    %c350_i32 = arith.constant 350 : i32
    %60 = tpu.dynamic_rotate %1 by %c350_i32 dim 1 : vector<4x384xf32>, i32 -> vector<4x384xf32>
    %61 = vector.extract_strided_slice %60 {offsets = [0, 0], sizes = [4, 256], strides = [1, 1]} : vector<4x384xf32> to vector<4x256xf32>
    %62 = vector.extract_strided_slice %2 {offsets = [0, 8], sizes = [4, 1], strides = [1, 1]} : vector<4x10xf32> to vector<4x1xf32>
    %63 = vector.broadcast %62 : vector<4x1xf32> to vector<4x256xf32>
    %64 = arith.mulf %61, %63 : vector<4x256xf32>
    %65 = arith.addf %47, %64 : vector<4x256xf32>
    %cst_6 = arith.constant 0.000000e+00 : f32
    %66 = vector.shape_cast %7 : vector<1x256xi1> to vector<1x256xi1>
    %67 = vector.broadcast %66 : vector<1x256xi1> to vector<4x256xi1>
    %68 = vector.broadcast %cst_6 : f32 to vector<4x256xf32>
    %69 = arith.select %67, %53, %68 : vector<4x256xi1>, vector<4x256xf32>
    %70 = arith.addf %59, %69 : vector<4x256xf32>
    %cst_7 = arith.constant 0.000000e+00 : f32
    %71 = vector.shape_cast %9 : vector<1x256xi1> to vector<1x256xi1>
    %72 = vector.broadcast %71 : vector<1x256xi1> to vector<4x256xi1>
    %73 = vector.broadcast %cst_7 : f32 to vector<4x256xf32>
    %74 = arith.select %72, %65, %73 : vector<4x256xi1>, vector<4x256xf32>
    %75 = arith.addf %70, %74 : vector<4x256xf32>
    %76 = vector.extract_strided_slice %2 {offsets = [0, 9], sizes = [4, 1], strides = [1, 1]} : vector<4x10xf32> to vector<4x1xf32>
    %77 = vector.broadcast %76 : vector<4x1xf32> to vector<4x256xf32>
    %78 = arith.addf %75, %77 : vector<4x256xf32>
    %cst_8 = arith.constant 0.000000e+00 : f32
    %79 = vector.broadcast %cst_8 : f32 to vector<4x256xf32>
    %80 = arith.maximumf %78, %79 : vector<4x256xf32>
    %c0_9 = arith.constant 0 : index
    %c0_10 = arith.constant 0 : index
    %81 = vector.load %arg3[%c0_9, %c0_10] : memref<8x5xf32, #tpu.memory_space<vmem>>, vector<8x5xf32>
    %82 = vector.extract_strided_slice %81 {offsets = [0, 0], sizes = [8, 4], strides = [1, 1]} : vector<8x5xf32> to vector<8x4xf32>
    %cst_11 = arith.constant dense<0.000000e+00> : vector<8x256xf32>
    %83 = tpu.matmul %82, %80, %cst_11 {dimension_numbers = #tpu.dot_dimension_numbers<[1], [0], [0], [1], [0, 0, 1, 1], [], []>, precision = #tpu.contract_precision<fp32>} : vector<8x4xf32>, vector<4x256xf32>, vector<8x256xf32> -> vector<8x256xf32>
    %84 = vector.extract_strided_slice %81 {offsets = [0, 4], sizes = [8, 1], strides = [1, 1]} : vector<8x5xf32> to vector<8x1xf32>
    %85 = vector.broadcast %84 : vector<8x1xf32> to vector<8x256xf32>
    %86 = arith.addf %83, %85 : vector<8x256xf32>
    %cst_12 = arith.constant 0.000000e+00 : f32
    %87 = vector.broadcast %cst_12 : f32 to vector<8x256xf32>
    %88 = arith.maximumf %86, %87 : vector<8x256xf32>
    %c0_13 = arith.constant 0 : index
    %c0_14 = arith.constant 0 : index
    %c0_15 = arith.constant 0 : index
    %89 = vector.load %arg4[%c0_13, %c0_14, %c0_15] : memref<1x8x256xf32, #tpu.memory_space<vmem>>, vector<1x8x256xf32>
    %90 = vector.shape_cast %89 : vector<1x8x256xf32> to vector<8x256xf32>
    %91 = vector.shape_cast %88 : vector<8x256xf32> to vector<1x8x256xf32>
    tpu.vector_store %arg4[%c0_13, %c0_14, %c0_15], %91 {strides = array<i32>} : memref<1x8x256xf32, #tpu.memory_space<vmem>>, vector<1x8x256xf32>,
    return
  }
  func.func @transform_0(%arg0: i32) -> (i32, i32, i32) {
    %c0_i32 = arith.constant 0 : i32
    %c0_i32_0 = arith.constant 0 : i32
    %c0_i32_1 = arith.constant 0 : i32
    return %arg0, %c0_i32, %c0_i32_0 : i32, i32, i32
  }
  func.func @transform_1(%arg0: i32) -> (i32, i32) {
    %c0_i32 = arith.constant 0 : i32
    %c0_i32_0 = arith.constant 0 : i32
    %c0_i32_1 = arith.constant 0 : i32
    return %c0_i32, %c0_i32_0 : i32, i32
  }
  func.func @transform_2(%arg0: i32) -> (i32, i32) {
    %c0_i32 = arith.constant 0 : i32
    %c0_i32_0 = arith.constant 0 : i32
    %c0_i32_1 = arith.constant 0 : i32
    return %c0_i32, %c0_i32_0 : i32, i32
  }
  func.func @transform_3(%arg0: i32) -> (i32, i32, i32) {
    %c0_i32 = arith.constant 0 : i32
    %c0_i32_0 = arith.constant 0 : i32
    %c0_i32_1 = arith.constant 0 : i32
    return %arg0, %c0_i32, %c0_i32_0 : i32, i32, i32
  }
}

</mosaic_0001>

<bundles_post_ra>
// kernel: dsc_forward.1
= control target key start
LH: loop header
LB: loop body
LE: loop exit
PB: predicated region body
PF: predicated region fallthrough
CT: control target
= control target key end

     0   :  { %s1010_s12 = smov 0   ;;  %s1132_s0 = inlined_call_operand.vmem [shape: f32[2,4,384], index: 0, kind: input, shape index: {}]   ;;  %s1133_s1 = inlined_call_operand.vmem [shape: f32[4,10], index: 1, kind: input, shape index: {}]   ;;  %s1134_s2 = inlined_call_operand.vmem [shape: f32[8,5], index: 2, kind: input, shape index: {}]   ;;  %s1135_s3 = inlined_call_operand.vmem [shape: f32[2,8,256], index: 3, kind: output, shape index: {}]  }
   0x1 LB: > { %s909_s13 = sadd.s32 4294967295, %s968_s12   ;;  %p913_p0 = scmp.ge.s32.totalorder %s968_s12, 1  ;;  %s968_s12 = sphi %s1010_s12, %s13_s12  }
   0x2   : > { %p137_p1 = scmp.lt.s32.totalorder %s968_s12, 3 }
   0x4   : > { %p138_p2 = pnand %p913_p0, %p137_p1 }
   0x5   : > { %p161_p3 = scmp.lt.s32.totalorder (!%p138_p2), %s909_s13, 1  ;;  %s974_s20 = smov (!%p138_p2), 112  }
   0x6   : > { %141 = sbr.rel (%p138_p2) target bundleno = 440 (0x1b8), region = 32  ;;  %s976_s21 = smov (!%p138_p2), 96  }
   0x7   : > { %s981_s22 = smov (!%p138_p2), 111   ;;  %s983_s23 = smov (!%p138_p2), 127  }
   0x8   : > { %s984_s24 = smov (!%p138_p2), 126   ;;  %s985_s25 = smov (!%p138_p2), 110  }
   0x9   : > { %s986_s26 = smov (!%p138_p2), 95   ;;  %s987_s27 = smov (!%p138_p2), 94  }
   0xb   : > { %v1021_v0 = vld [vmem:[%s1133_s1] sm:$0xf]  ;;  %v970_v1 = vmov 6   ;;  %v971_v2 = vmov 0   ;;  %s1139_s13 = smov (!%p161_p3, %s909_s13), 1  ;;  %v972_v3 = vmov 3   ;;  %v174_v35 = vlaneseq }
   0xc   : > { %951 = vset.pattern.permute.xlu1 %v970_v1  ;;  %949 = vset.pattern.permute.xlu0 %v971_v2  ;;  %s920_s16 = smul.u32 12, %s1139_s13  ;;  %v973_v4 = vmov 1   ;;  %v975_v8 = vmov 4   ;;  %v977_v9 = vmov 2   ;;  %v978_v10 = vmov 8   ;;  %v1054_v14 = vld [vmem:[%s1134_s2] sm:$0xff] }
   0xd   : > { %298 = vperm.xlu1 %951, %v1021_v0   ;;  %185 = vperm.xlu0 %949, %v1021_v0   ;;  %v979_v11 = vmov 5   ;;  %v980_v12 = vmov 7   ;;  %v982_v13 = vmov 9   ;;  %v988_v15 = vmov 0.0   ;;  %s919_s30 = sshll.u32 %s1139_s13, 4 }
   0xe   : > { %s165_s19 = scalar_lea.vmem %s1132_s0, %s920_s16  ;;  %451 = vmatprep.mubr.f32.mxu0 %v988_v15  ;;  %537 = vmatprep.mubr.f32.mxu1 %v988_v15  ;;  %v989_v37 = vmov 839922192   ;;  %v1071_v39 = vand.u32 127, %v174_v35  ;;  %v191_v43 = vshrl.u32 %v174_v35, 7  ;;  %vm375_vm5 = vcmask 31744   ;;  %s170_s6 = scalar_lea.vmem %s1135_s3, %s919_s30 }
   0xf   : > { %v1032_v5 = vld [vmem:[%s165_s19] sm:$0xff]  ;;  %v172_v6 = vld [vmem:[%s165_s19 + $0x8] sm:$0xf]  ;;  %v188_v38 = vunpack.c.l.s4 %v989_v37  ;;  %vm378_vm13 = vcmask 1043456  }
  0x10   : > { %v198_v7 = vcombine.high %v1032_v5, %v1032_v5  ;;  %vm240_vm0 = vcmp.lt.s32.totalorder %v1071_v39, 112  ;;  %vm294_vm1 = vcmp.lt.s32.totalorder %v1071_v39, 96  ;;  %vm260_vm2 = vcmp.lt.s32.totalorder %v1071_v39, 111 }
  0x11   : > { %950 = vset.pattern.permute.xlu0 %v972_v3  ;;  %952 = vset.pattern.permute.xlu1 %v973_v4  ;;  %v189_v42 = vunpack.c.0.s8 %v188_v38  ;;  %v176_v61 = vadd.s32 128, %v1071_v39  ;;  %vm277_vm3 = vcmp.lt.s32.totalorder %v1071_v39, 110  ;;  %vm206_vm4 = vcmp.lt.s32.totalorder %v1071_v39, 127 }
  0x12   : > { %244 = vperm.xlu0 %950, %v1021_v0   ;;  %234 = vrot.lane.b32.xlu1 %v1032_v5, %s974_s20  ;;  %vm223_vm6 = vcmp.lt.s32.totalorder %v1071_v39, 126  ;;  %vm314_vm7 = vcmp.lt.s32.totalorder %v1071_v39, 95  ;;  %vm331_vm8 = vcmp.lt.s32.totalorder %v1071_v39, 94 }
  0x13   : > { %v192_v45 = vsub.s32 %v189_v42, %v191_v43 }
  0x16   : > { %238 = vrot.lane.b32.xlu0 %v172_v6, %s974_s20  ;;  %236 = vrot.lane.b32.xlu1 %v198_v7, %s974_s20 }
  0x17   : > { %953 = vset.pattern.permute.xlu0 %v975_v8 }
  0x1a   : > { %264 = vperm.xlu0 %953, %v1021_v0   ;;  %210 = vperm.xlu1 %952, %v1021_v0  }
  0x1e   : > { %288 = vrot.lane.b32.xlu0 %v1032_v5, %s976_s21  ;;  %954 = vset.pattern.permute.xlu1 %v977_v9 }
  0x1f   : > { %957 = vset.pattern.permute.xlu0 %v978_v10  ;;  %227 = vperm.xlu1 %954, %v1021_v0  }
  0x22   : > { %292 = vrot.lane.b32.xlu0 %v172_v6, %s976_s21 }
  0x23   : > { %955 = vset.pattern.permute.xlu1 %v979_v11  ;;  %v177_v11 = vand.u32 15, %v1071_v39 }
  0x24   : > { %281 = vperm.xlu1 %955, %v1021_v0  }
  0x25   : > { %vm179_vm11 = vcmp.ge.s32.totalorder %v177_v11, 1  ;;  %vm181_vm12 = vcmp.le.s32.totalorder %v177_v11, 14 }
  0x26   : > { %335 = vperm.xlu0 %957, %v1021_v0  }
  0x28   : > { %290 = vrot.lane.b32.xlu1 %v198_v7, %s976_s21 }
  0x29   : > { %956 = vset.pattern.permute.xlu1 %v980_v12  ;;  %v376_v12 = vsel %vm375_vm5, %v1054_v14, 0 }
  0x2a   : > { %256 = vrot.lane.b32.xlu0 %v198_v7, %s981_s22  ;;  %v1104_v35 = vand.u32 4294901760, %v376_v12 }
  0x2b   : > { %958 = vset.pattern.permute.xlu0 %v982_v13 }
  0x2c   : > { %318 = vperm.xlu1 %956, %v1021_v0  }
  0x2e   : > { %200 = vrot.lane.b32.xlu0 %v1032_v5, %s983_s23 }
  0x30   : > { %202 = vrot.lane.b32.xlu1 %v198_v7, %s983_s23 }
  0x31   : > { %959 = vset.pattern.permute.xlu1 %v975_v8 }
  0x32   : > { %221 = vrot.lane.b32.xlu0 %v172_v6, %s984_s24 }
  0x34   : > { %204 = vrot.lane.b32.xlu1 %v172_v6, %s983_s23 }
  0x36   : > { %273 = vrot.lane.b32.xlu0 %v198_v7, %s985_s25 }
  0x38   : > { %258 = vrot.lane.b32.xlu1 %v172_v6, %s981_s22 }
  0x3a   : > { %217 = vrot.lane.b32.xlu0 %v1032_v5, %s984_s24 }
  0x3c   : > { %219 = vrot.lane.b32.xlu1 %v198_v7, %s984_s24 }
  0x3e   : > { %310 = vrot.lane.b32.xlu0 %v198_v7, %s986_s26 }
  0x40   : > { %254 = vrot.lane.b32.xlu1 %v1032_v5, %s981_s22 }
  0x42   : > { %308 = vrot.lane.b32.xlu0 %v1032_v5, %s986_s26 }
  0x44   : > { %275 = vrot.lane.b32.xlu1 %v172_v6, %s985_s25 }
  0x46   : > { %329 = vrot.lane.b32.xlu0 %v172_v6, %s987_s27 }
  0x48   : > { %271 = vrot.lane.b32.xlu1 %v1032_v5, %s985_s25 }
  0x4a   : > { %362 = vperm.xlu0 %958, %v1021_v0  }
  0x4c   : > { %312 = vrot.lane.b32.xlu1 %v172_v6, %s986_s26 }
  0x4e   : > { %960 = vset.pattern.permute.xlu0 %v975_v8 }
  0x50   : > { %327 = vrot.lane.b32.xlu1 %v198_v7, %s987_s27  ;;  %v178_v7 = vand.u32 15, %v176_v61 }
  0x52   : > { %vm1097_vm9 = vcmp.ge.s32.totalorder %v178_v7, 1  ;;  %vm182_vm10 = vcmp.le.s32.totalorder %v178_v7, 14 }
  0x54   : > { %325 = vrot.lane.b32.xlu1 %v1032_v5, %s987_s27 }
  0x58   : > { %372 = vperm.xlu1 %959, %v1054_v14  }
  0x88   : > { %v299_v16 = vpop.permute.xlu1 %298  ;;  %v186_v17 = vpop.permute.xlu0 %185 }
  0x89   : > { %v193_v52 = vrot.slane %v186_v17, %v192_v45 }
  0x8b   : > { %v195_v59 = vmul.f32 %v193_v52, %v1032_v5 }
  0x8c   : > { %v235_v18 = vpop.permute.xlu1 %234 }
  0x8d   : > { %v245_v19 = vpop.permute.xlu0 %244 }
  0x90   : > { %v237_v21 = vpop.permute.xlu1 %236 }
  0x91   : > { %v239_v20 = vpop.permute.xlu0 %238  ;;  %v242_v46 = vsel %vm240_vm0, %v235_v18, %v237_v21 }
  0x92   : > { %v241_v47 = vsel %vm240_vm0, %v237_v21, %v239_v20  ;;  %v247_v53 = vmul.f32 %v245_v19, %v242_v46 }
  0x93   : > { %v248_v54 = vmul.f32 %v245_v19, %v241_v47 }
  0x95   : > { %v1059_v22 = vpop.permute.xlu0 %264  ;;  %v1061_v23 = vpop.permute.xlu1 %210  ;;  %v251_v60 = vcombine.low %v247_v53, %v248_v54 }
  0x97   : > { %v253_v1 = vadd.f32 %v251_v60, %v195_v59 }
  0x99   : > { %v289_v24 = vpop.permute.xlu0 %288 }
  0x9a   : > { %v1063_v25 = vpop.permute.xlu1 %227 }
  0x9d   : > { %v293_v26 = vpop.permute.xlu0 %292 }
  0x9f   : > { %v1065_v27 = vpop.permute.xlu1 %281 }
  0xa1   : > { %v1067_v28 = vpop.permute.xlu0 %335 }
  0xa3   : > { %v291_v29 = vpop.permute.xlu1 %290 }
  0xa4   : > { %v295_v50 = vsel %vm294_vm1, %v291_v29, %v293_v26  ;;  %v296_v51 = vsel %vm294_vm1, %v289_v24, %v291_v29 }
  0xa5   : > { %v257_v30 = vpop.permute.xlu0 %256  ;;  %v301_v55 = vmul.f32 %v299_v16, %v296_v51  ;;  %v302_v56 = vmul.f32 %v299_v16, %v295_v50 }
  0xa7   : > { %v1069_v31 = vpop.permute.xlu1 %318  ;;  %v305_v62 = vcombine.low %v301_v55, %v302_v56 }
  0xa9   : > { %v201_v32 = vpop.permute.xlu0 %200  ;;  %v307_v8 = vadd.f32 %v305_v62, %v253_v1 }
  0xab   : > { %v203_v33 = vpop.permute.xlu1 %202  ;;  %v349_v54 = vsel %vm179_vm11, %v307_v8, 0.0 }
  0xac   : > { %v208_v9 = vsel %vm206_vm4, %v201_v32, %v203_v33 }
  0xad   : > { %v222_v34 = vpop.permute.xlu0 %221  ;;  %v213_v24 = vmul.f32 %v1061_v23, %v208_v9 }
  0xaf   : > { %v205_v36 = vpop.permute.xlu1 %204 }
  0xb0   : > { %v207_v2 = vsel %vm206_vm4, %v203_v33, %v205_v36 }
  0xb1   : > { %v274_v41 = vpop.permute.xlu0 %273  ;;  %v214_v13 = vmul.f32 %v1061_v23, %v207_v2 }
  0xb3   : > { %v259_v40 = vpop.permute.xlu1 %258 }
  0xb4   : > { %v261_v63 = vsel %vm260_vm2, %v257_v30, %v259_v40 }
  0xb5   : > { %v218_v48 = vpop.permute.xlu0 %217  ;;  %v268_v4 = vmul.f32 %v1059_v22, %v261_v63 }
  0xb7   : > { %v220_v44 = vpop.permute.xlu1 %219  ;;  %v270_v26 = vadd.f32 %v268_v4, %v214_v13 }
  0xb8   : > { %v224_v16 = vsel %vm223_vm6, %v220_v44, %v222_v34  ;;  %v347_v34 = vcombine.high %v307_v8, %v307_v8 }
  0xb9   : > { %v311_v58 = vpop.permute.xlu0 %310 }
  0xba   : > { %v350_v46 = vsel %vm1097_vm9, %v347_v34, 0.0 }
  0xbb   : > { %v255_v49 = vpop.permute.xlu1 %254 }
  0xbc   : > { %v262_v3 = vsel %vm260_vm2, %v255_v49, %v257_v30  ;;  %v231_v30 = vmul.f32 %v1063_v25, %v224_v16  ;;  %v453_v49 = vsub.f32 %v376_v12, %v1104_v35 }
  0xbd   : > { %v309_v5 = vpop.permute.xlu0 %308  ;;  %v267_v17 = vmul.f32 %v1059_v22, %v262_v3  ;;  %v225_v22 = vsel %vm223_vm6, %v218_v48, %v220_v44 }
  0xbe   : > { %v316_v19 = vsel %vm314_vm7, %v309_v5, %v311_v58  ;;  %v230_v43 = vmul.f32 %v1063_v25, %v225_v22 }
  0xbf   : > { %v276_v57 = vpop.permute.xlu1 %275  ;;  %v269_v36 = vadd.f32 %v267_v17, %v213_v24  ;;  %v321_v23 = vmul.f32 %v1069_v31, %v316_v19 }
  0xc0   : > { %v278_v6 = vsel %vm277_vm3, %v274_v41, %v276_v57  ;;  %v454_v57 = vand.u32 4294901760, %v453_v49 }
  0xc1   : > { %v285_v20 = vmul.f32 %v1065_v27, %v278_v6  ;;  %v330_v32 = vpop.permute.xlu0 %329  ;;  %v323_v47 = vadd.f32 %v321_v23, %v269_v36 }
  0xc2   : > { %v455_v62 = vsub.f32 %v453_v49, %v454_v57 }
  0xc3   : > { %v272_v0 = vpop.permute.xlu1 %271  ;;  %v287_v40 = vadd.f32 %v285_v20, %v231_v30  ;;  %v351_v55 = vadd.f32 %v349_v54, %v323_v47 }
  0xc4   : > { %v279_v14 = vsel %vm277_vm3, %v272_v0, %v274_v41  ;;  %v456_v2 = vand.u32 4294901760, %v455_v62 }
  0xc5   : > { %v284_v41 = vmul.f32 %v1065_v27, %v279_v14  ;;  %v363_v51 = vpop.permute.xlu0 %362 }
  0xc7   : > { %v313_v10 = vpop.permute.xlu1 %312  ;;  %v286_v50 = vadd.f32 %v284_v41, %v230_v43 }
  0xc8   : > { %v315_v18 = vsel %vm314_vm7, %v311_v58, %v313_v10 }
  0xc9   : > { %v322_v21 = vmul.f32 %v1069_v31, %v315_v18 }
  0xcb   : > { %v328_v33 = vpop.permute.xlu1 %327  ;;  %v324_v37 = vadd.f32 %v322_v21, %v270_v26 }
  0xcc   : > { %v332_v38 = vsel %vm331_vm8, %v328_v33, %v330_v32 }
  0xcd   : > { %v339_v42 = vmul.f32 %v1067_v28, %v332_v38  ;;  %v352_v48 = vadd.f32 %v350_v46, %v324_v37 }
  0xcf   : > { %v341_v44 = vadd.f32 %v339_v42, %v287_v40  ;;  %v326_v45 = vpop.permute.xlu1 %325 }
  0xd0   : > { %v333_v31 = vsel %vm331_vm8, %v326_v45, %v328_v33 }
  0xd1   : > { %v338_v27 = vmul.f32 %v1067_v28, %v333_v31  ;;  %v358_v52 = vsel %vm182_vm10, %v341_v44, 0.0 }
  0xd2   : > { %v360_v25 = vadd.f32 %v358_v52, %v352_v48 }
  0xd3   : > { %v340_v53 = vadd.f32 %v338_v27, %v286_v50  ;;  %v373_v12 = vpop.permute.xlu1 %372 }
  0xd4   : > { %v366_v56 = vadd.f32 %v363_v51, %v360_v25 }
  0xd5   : > { %v357_v58 = vsel %vm181_vm12, %v340_v53, 0.0 }
  0xd6   : > { %v359_v59 = vadd.f32 %v357_v58, %v351_v55  ;;  %v368_v39 = vmax.f32 %v366_v56, 0.0 }
  0xd8   : > { %v365_v60 = vadd.f32 %v363_v51, %v359_v59  ;;  %v383_v61 = vsel %vm378_vm13, %v368_v39, 0 }
  0xd9   : > { %v415_v63 = vand.u32 4294901760, %v383_v61 }
  0xda   : > { %v367_v0 = vmax.f32 %v365_v60, 0.0 }
  0xdb   : > { %416 = vmatprep.subr.mxu0 %v415_v63  ;;  %v494_v28 = vsub.f32 %v383_v61, %v415_v63 }
  0xdc   : > { %v380_v1 = vsel %vm378_vm13, %v367_v0, 0 }
  0xdd   : > { %v417_v3 = vand.u32 4294901760, %v380_v1  ;;  %v495_v4 = vand.u32 4294901760, %v494_v28 }
  0xdf   : > { %v500_v5 = vsub.f32 %v380_v1, %v417_v3  ;;  %418 = vmatpush1.msra.mxu0 %v417_v3  ;;  %v496_v6 = vsub.f32 %v494_v28, %v495_v4 }
  0xe0   : > { %457 = vmatmul.mubr.f32.vlgmr.msra.gmra.mxu0 %v456_v2  ;;  %577 = vmatprep.subr.mxu0 %v494_v28 }
  0xe1   : > { %580 = vmatpush1.msra.mxu0 %v500_v5  ;;  %v497_v7 = vand.u32 4294901760, %v496_v6  ;;  %613 = vmatprep.mubr.f32.mxu0 %v988_v15  ;;  %v501_v8 = vand.u32 4294901760, %v500_v5 }
  0xe2   : > { %731 = vmatprep.subr.mxu0 %v495_v4 }
  0xe3   : > { %498 = vmatprep.subr.mxu1 %v497_v7  ;;  %v502_v9 = vsub.f32 %v500_v5, %v501_v8 }
  0xe4   : > { %616 = vmatmul.mubr.f32.vlgmr.msra.gmra.mxu0 %v453_v49 }
  0xe5   : > { %735 = vmatpush1.msra.mxu0 %v501_v8  ;;  %v503_v10 = vand.u32 4294901760, %v502_v9  ;;  %768 = vmatprep.mubr.f32.mxu0 %v988_v15 }
  0xe7   : > { %504 = vmatpush1.msra.mxu1 %v503_v10 }
  0xe8   : > { %539 = vmatmul.mubr.f32.vlgmr.msra.gmra.mxu1 %v1104_v35  ;;  %653 = vmatprep.subr.mxu1 %v415_v63 }
  0xe9   : > { %655 = vmatpush1.msra.mxu1 %v417_v3  ;;  %688 = vmatprep.mubr.f32.mxu1 %v988_v15 }
  0xea   : > { %807 = vmatprep.subr.mxu1 %v415_v63  ;;  %770 = vmatmul.mubr.f32.vlgmr.msra.gmra.mxu0 %v1104_v35 }
  0xec   : > { %692 = vmatmul.mubr.f32.vlgmr.msra.gmra.mxu1 %v454_v57 }
  0xed   : > { %809 = vmatpush1.msra.mxu1 %v417_v3  ;;  %842 = vmatprep.mubr.f32.mxu1 %v988_v15 }
  0xf0   : > { %844 = vmatmul.mubr.f32.vlgmr.msra.gmra.mxu1 %v1104_v35 }
 0x1a0   : > { %v458_v11 = vpop.f32.mrf.mxu0 }
 0x1a1   : > { %v459_v17 = vadd.f32 %v458_v11, %v373_v12 }
 0x1a2   : > { %v460_v13 = vpop.f32.mrf.mxu0 }
 0x1a3   : > { %v461_v20 = vadd.f32 %v460_v13, %v373_v12 }
 0x1a4   : > { %v617_v16 = vpop.f32.mrf.mxu0 }
 0x1a6   : > { %v619_v19 = vpop.f32.mrf.mxu0 }
 0x1a8   : > { %v540_v18 = vpop.f32.mrf.mxu1 }
 0x1a9   : > { %v541_v21 = vadd.f32 %v540_v18, %v459_v17 }
 0x1aa   : > { %v542_v24 = vpop.f32.mrf.mxu1  ;;  %v771_v22 = vpop.f32.mrf.mxu0 }
 0x1ab   : > { %v618_v26 = vadd.f32 %v617_v16, %v541_v21  ;;  %v543_v14 = vadd.f32 %v542_v24, %v461_v20 }
 0x1ac   : > { %v693_v29 = vpop.f32.mrf.mxu1  ;;  %v773_v35 = vpop.f32.mrf.mxu0 }
 0x1ad   : > { %v620_v30 = vadd.f32 %v619_v19, %v543_v14  ;;  %v694_v32 = vadd.f32 %v693_v29, %v618_v26 }
 0x1ae   : > { %v695_v15 = vpop.f32.mrf.mxu1 }
 0x1af   : > { %v772_v33 = vadd.f32 %v771_v22, %v694_v32  ;;  %v696_v34 = vadd.f32 %v695_v15, %v620_v30 }
 0x1b0   : > { %v845_v36 = vpop.f32.mrf.mxu1 }
 0x1b1   : > { %v774_v23 = vadd.f32 %v773_v35, %v696_v34  ;;  %v846_v37 = vadd.f32 %v845_v36, %v772_v33 }
 0x1b2   : > { %v847_v38 = vpop.f32.mrf.mxu1 }
 0x1b3   : > { %v850_v40 = vmax.f32 %v846_v37, 0.0  ;;  %v848_v41 = vadd.f32 %v847_v38, %v774_v23 }
 0x1b5   : > { %852 = vst [vmem:[%s170_s6] sm:$0xff] %v850_v40  ;;  %v851_v42 = vmax.f32 %v848_v41, 0.0 }
 0x1b7   : > { %853 = vst [vmem:[%s170_s6 + $0x8] sm:$0xff] %v851_v42 }
 0x1b8 PF: > { %s13_s12 = sadd.s32 1, %s968_s12  }
 0x1b9   : > { %p10_p4 = scmp.ge.s32.totalorder %s13_s12, 4  }
 0x1bb   :  { %12 = sbr.rel (!%p10_p4) target bundleno = 1 (0x1), region = 62 }

</bundles_post_ra>
